<compile_context>
chip_gen: v7x
topology: tpu7x:2x2x1
jax: 0.10.0
libtpu: 0.0.40
codegen_flags: <defaults>
</compile_context>

<pallas_src>
import functools

import numpy as np

import jax
import jax.numpy as jnp
from jax import lax
from jax.experimental import pallas as pl
from jax.experimental.pallas import tpu as pltpu

F32 = jnp.float32
BF16 = jnp.bfloat16
LEAKY_SLOPE = 0.1      # KPConv convention.  TODO(synk): confirm vs nn.LeakyReLU default 0.01.
BIG = 1e10

LANE_TILE = 2048       # cap for linear / elementwise point tiles
KP_LANE_TILE = 1024    # cap for KPConv / maxpool tiles (H*C per lane element)
SQD_TILE_M = 256
SQD_TILE_N = 512
VMEM_LIMIT = 48 * 1024 * 1024


def _round_up(x, m):
    return (x + m - 1) // m * m


def _pick_tile(n, cap):
    # dynamic lane tile: biggest multiple of 128 that does not over-pad small n
    return min(cap, _round_up(max(int(n), 1), 128))


def _pad_axis(x, axis, target):
    pad = target - x.shape[axis]
    if pad <= 0:
        return x
    widths = [(0, 0)] * x.ndim
    widths[axis] = (0, pad)
    return jnp.pad(x, widths)


def _cparams(n_parallel):
    return pltpu.CompilerParams(
        dimension_semantics=("parallel",) * n_parallel,
        vmem_limit_bytes=VMEM_LIMIT)


# --------------------------------------------------------------------------
# linear (1x1 conv) in channels-major layout + fused GN partial moments
#   out (Co, N) = W_bf16 @ [prologue(x)] + b ;  moments (T, Co, 2)
# optional prologue: x <- x*scale + shift (+ leaky)   (fuses previous GN-apply)
# --------------------------------------------------------------------------
def _linear_gn_kernel(*refs, pre, pre_act, n_valid, tile):
    i = 0
    x_ref = refs[i]; i += 1
    w_ref = refs[i]; i += 1
    b_ref = refs[i]; i += 1
    if pre:
        psc_ref = refs[i]; i += 1
        psh_ref = refs[i]; i += 1
    o_ref = refs[i]; i += 1
    st_ref = refs[i]; i += 1

    x = x_ref[...]                                    # (Cin, tile) f32
    if pre:
        x = x * psc_ref[...] + psh_ref[...]
        if pre_act:
            x = jnp.where(x >= 0.0, x, LEAKY_SLOPE * x)
    y = jnp.dot(w_ref[...], x.astype(BF16),
                preferred_element_type=jnp.float32) + b_ref[...]   # (Co, tile)
    o_ref[...] = y

    # per-tile GN partial moments over valid lanes only
    col = lax.broadcasted_iota(jnp.int32, (1, tile), 1) + pl.program_id(0) * tile
    ym = jnp.where(col < n_valid, y, 0.0)
    s1 = jnp.sum(ym, axis=1, keepdims=True)           # (Co, 1)
    s2 = jnp.sum(ym * ym, axis=1, keepdims=True)      # (Co, 1)
    st_ref[...] = jnp.concatenate([s1, s2], axis=1)[None]          # (1, Co, 2)


def pallas_linear_gn_cm(xT, w, b, *, pre_scale=None, pre_shift=None,
                        pre_act=False, cap=LANE_TILE):
    Cin, N = xT.shape
    Co = w.shape[1]
    tile = _pick_tile(N, cap)
    Np = _round_up(max(N, 1), tile)
    xp = _pad_axis(xT.astype(F32), 1, Np)
    wT = jnp.transpose(w.astype(F32)).astype(BF16)                  # (Co, Cin) bf16, constant
    bcol = b.astype(F32).reshape(Co, 1)

    args = [xp, wT, bcol]
    in_specs = [
        pl.BlockSpec((Cin, tile), lambda i: (0, i)),
        pl.BlockSpec((Co, Cin), lambda i: (0, 0)),
        pl.BlockSpec((Co, 1), lambda i: (0, 0)),
    ]
    pre = pre_scale is not None
    if pre:
        args += [pre_scale.astype(F32).reshape(Cin, 1),
                 pre_shift.astype(F32).reshape(Cin, 1)]
        in_specs += [pl.BlockSpec((Cin, 1), lambda i: (0, 0)),
                     pl.BlockSpec((Cin, 1), lambda i: (0, 0))]

    yT, mom = pl.pallas_call(
        functools.partial(_linear_gn_kernel, pre=pre, pre_act=pre_act,
                          n_valid=N, tile=tile),
        out_shape=(jax.ShapeDtypeStruct((Co, Np), F32),
                   jax.ShapeDtypeStruct((Np // tile, Co, 2), F32)),
        grid=(Np // tile,),
        in_specs=in_specs,
        out_specs=(pl.BlockSpec((Co, tile), lambda i: (0, i)),
                   pl.BlockSpec((1, Co, 2), lambda i: (i, 0, 0))),
        compiler_params=_cparams(1),
    )(*args)
    return yT[:, :N], mom


def moments_to_scale_shift(moments, n_valid, groups, gamma, beta, eps=1e-5):
    # tiny reduction over tiles / channels-per-group; matches nn.GroupNorm on (1, C, N)
    tot = jnp.sum(moments, axis=0)                    # (C, 2)
    C = tot.shape[0]
    cpg = C // groups
    cnt = float(max(int(n_valid), 1) * cpg)
    s1 = jnp.sum(tot[:, 0].reshape(groups, cpg), axis=1)
    s2 = jnp.sum(tot[:, 1].reshape(groups, cpg), axis=1)
    mean = s1 / cnt
    var = jnp.maximum(s2 / cnt - mean * mean, 0.0)
    inv = lax.rsqrt(var + eps)
    inv_c = jnp.repeat(inv, cpg)
    mean_c = jnp.repeat(mean, cpg)
    scale = gamma.astype(F32) * inv_c
    shift = beta.astype(F32) - mean_c * scale
    return scale, shift


# --------------------------------------------------------------------------
# fused GroupNorm-apply (+ optional residual add) (+ optional leaky)
# --------------------------------------------------------------------------
def _gn_apply_kernel(*refs, act, has_res):
    if has_res:
        y_ref, sc_ref, sh_ref, r_ref, o_ref = refs
    else:
        y_ref, sc_ref, sh_ref, o_ref = refs
    y = y_ref[...] * sc_ref[...] + sh_ref[...]
    if has_res:
        y = y + r_ref[...]
    if act:
        y = jnp.where(y >= 0.0, y, LEAKY_SLOPE * y)
    o_ref[...] = y


def pallas_gn_apply(yT, scale, shift, act, residualT=None, cap=LANE_TILE):
    C, N = yT.shape
    tile = _pick_tile(N, cap)
    Np = _round_up(max(N, 1), tile)
    args = [_pad_axis(yT.astype(F32), 1, Np),
            scale.astype(F32).reshape(C, 1),
            shift.astype(F32).reshape(C, 1)]
    in_specs = [
        pl.BlockSpec((C, tile), lambda i: (0, i)),
        pl.BlockSpec((C, 1), lambda i: (0, 0)),
        pl.BlockSpec((C, 1), lambda i: (0, 0)),
    ]
    has_res = residualT is not None
    if has_res:
        args.append(_pad_axis(residualT.astype(F32), 1, Np))
        in_specs.append(pl.BlockSpec((C, tile), lambda i: (0, i)))
    out = pl.pallas_call(
        functools.partial(_gn_apply_kernel, act=act, has_res=has_res),
        out_shape=jax.ShapeDtypeStruct((C, Np), F32),
        grid=(Np // tile,),
        in_specs=in_specs,
        out_specs=pl.BlockSpec((C, tile), lambda i: (0, i)),
        compiler_params=_cparams(1),
    )(*args)
    return out[:, :N]


def unary_block_cm(p, xT, groups, act):
    yT, mom = pallas_linear_gn_cm(xT, p["w"], p["b"])
    sc, sh = moments_to_scale_shift(mom, xT.shape[1], groups, p["gamma"], p["beta"])
    return pallas_gn_apply(yT, sc, sh, act=act)


# --------------------------------------------------------------------------
# fused vote MLP: off = clip(W2 relu(W1 x + b1) + b2)   (bf16 MXU, f32 epilogue)
# --------------------------------------------------------------------------
def _vote_mlp_kernel(x_ref, w1_ref, b1_ref, w2_ref, b2_ref, o_ref, *, max_t):
    h = jnp.dot(w1_ref[...], x_ref[...].astype(BF16),
                preferred_element_type=jnp.float32) + b1_ref[...]
    h = jnp.maximum(h, 0.0)
    off = jnp.dot(w2_ref[...], h.astype(BF16),
                  preferred_element_type=jnp.float32) + b2_ref[...]
    o_ref[...] = jnp.clip(off, -max_t, max_t)


def pallas_vote_mlp(featsT, p1, p2, max_translate, cap=LANE_TILE):
    Cin, N = featsT.shape
    Ch = p1["w"].shape[1]
    tile = _pick_tile(N, cap)
    Np = _round_up(max(N, 1), tile)
    xp = _pad_axis(featsT.astype(F32), 1, Np)
    out = pl.pallas_call(
        functools.partial(_vote_mlp_kernel, max_t=float(max_translate)),
        out_shape=jax.ShapeDtypeStruct((3, Np), F32),
        grid=(Np // tile,),
        in_specs=[
            pl.BlockSpec((Cin, tile), lambda i: (0, i)),
            pl.BlockSpec((Ch, Cin), lambda i: (0, 0)),
            pl.BlockSpec((Ch, 1), lambda i: (0, 0)),
            pl.BlockSpec((3, Ch), lambda i: (0, 0)),
            pl.BlockSpec((3, 1), lambda i: (0, 0)),
        ],
        out_specs=pl.BlockSpec((3, tile), lambda i: (0, i)),
        compiler_params=_cparams(1),
    )(xp,
      jnp.transpose(p1["w"].astype(F32)).astype(BF16), p1["b"].astype(F32).reshape(Ch, 1),
      jnp.transpose(p2["w"].astype(F32)).astype(BF16), p2["b"].astype(F32).reshape(3, 1))
    return jnp.transpose(out[:, :N])          # (N, 3)


# --------------------------------------------------------------------------
# pairwise squared distances, cloud-id mask fused in-kernel, norms precomputed
# --------------------------------------------------------------------------
def _sqdist_kernel(q_ref, st_ref, qq_ref, ss_ref, qid_ref, sid_ref, o_ref):
    d = qq_ref[...] + ss_ref[...] - 2.0 * jnp.dot(
        q_ref[...], st_ref[...], preferred_element_type=jnp.float32)
    same = qid_ref[...] == sid_ref[...]
    o_ref[...] = jnp.where(same, jnp.maximum(d, 0.0), BIG)


def pallas_sqdist_masked(q, s, q_ids, s_ids, cap_m=SQD_TILE_M, cap_n=SQD_TILE_N):
    M, N = q.shape[0], s.shape[0]
    tm, tn = _pick_tile(M, cap_m), _pick_tile(N, cap_n)
    Mp, Np = _round_up(max(M, 1), tm), _round_up(max(N, 1), tn)
    qf, sf = q.astype(F32), s.astype(F32)
    q8 = jnp.zeros((Mp, 8), F32).at[:M, :3].set(qf)
    s8t = jnp.zeros((8, Np), F32).at[:3, :N].set(jnp.transpose(sf))
    qq = _pad_axis(jnp.sum(qf * qf, axis=1, keepdims=True), 0, Mp)          # (Mp, 1)
    ss = _pad_axis(jnp.transpose(jnp.sum(sf * sf, axis=1, keepdims=True)), 1, Np)  # (1, Np)
    qid = jnp.full((Mp, 1), -1, jnp.int32).at[:M, 0].set(q_ids.astype(jnp.int32))
    sid = jnp.full((1, Np), -2, jnp.int32).at[0, :N].set(s_ids.astype(jnp.int32))
    out = pl.pallas_call(
        _sqdist_kernel,
        out_shape=jax.ShapeDtypeStruct((Mp, Np), F32),
        grid=(Mp // tm, Np // tn),
        in_specs=[
            pl.BlockSpec((tm, 8), lambda i, j: (i, 0)),
            pl.BlockSpec((8, tn), lambda i, j: (0, j)),
            pl.BlockSpec((tm, 1), lambda i, j: (i, 0)),
            pl.BlockSpec((1, tn), lambda i, j: (0, j)),
            pl.BlockSpec((tm, 1), lambda i, j: (i, 0)),
            pl.BlockSpec((1, tn), lambda i, j: (0, j)),
        ],
        out_specs=pl.BlockSpec((tm, tn), lambda i, j: (i, j)),
        compiler_params=_cparams(2),
    )(q8, s8t, qq, ss, qid, sid)
    return out[:M, :N]


# --------------------------------------------------------------------------
# cluster-center averaging (lane-dense over points)
# --------------------------------------------------------------------------
def _centers_kernel(ptsT_ref, cnt_ref, o_ref):
    s = jnp.sum(ptsT_ref[...], axis=0)                 # (3, tm)
    o_ref[...] = s / jnp.maximum(cnt_ref[...], 1.0)


def pallas_centers(knn_pts, counts, cap=LANE_TILE):
    M, Kn, _ = knn_pts.shape
    tile = _pick_tile(M, cap)
    Mp = _round_up(max(M, 1), tile)
    ptsT = _pad_axis(jnp.transpose(knn_pts.astype(F32), (1, 2, 0)), 2, Mp)   # (Kn,3,Mp)
    cnt = _pad_axis(counts.astype(F32).reshape(1, M), 1, Mp)                  # (1,Mp)
    out = pl.pallas_call(
        _centers_kernel,
        out_shape=jax.ShapeDtypeStruct((3, Mp), F32),
        grid=(Mp // tile,),
        in_specs=[
            pl.BlockSpec((Kn, 3, tile), lambda i: (0, 0, i)),
            pl.BlockSpec((1, tile), lambda i: (0, i)),
        ],
        out_specs=pl.BlockSpec((3, tile), lambda i: (0, i)),
        compiler_params=_cparams(1),
    )(ptsT, cnt)
    return jnp.transpose(out[:, :M])                   # (M, 3)


# --------------------------------------------------------------------------
# neighbor max-pool (strided shortcut), reference KPConv semantics:
# shadow neighbors gather the zero pad row and participate in the max.
# --------------------------------------------------------------------------
def _maxpool_kernel(nfT_ref, o_ref):
    o_ref[...] = jnp.max(nfT_ref[...], axis=0).astype(F32)


def pallas_neighbor_maxpool_cm(s_featsT, neighbor_indices, cap=KP_LANE_TILE):
    C, Ns = s_featsT.shape
    M, H = neighbor_indices.shape
    tile = _pick_tile(M, cap)
    Mp = _round_up(max(M, 1), tile)
    feats_bf = jnp.concatenate([s_featsT.astype(BF16), jnp.zeros((C, 1), BF16)], axis=1)
    nfT = _pad_axis(jnp.transpose(feats_bf[:, neighbor_indices], (2, 0, 1)), 2, Mp)  # (H,C,Mp) bf16
    out = pl.pallas_call(
        _maxpool_kernel,
        out_shape=jax.ShapeDtypeStruct((C, Mp), F32),
        grid=(Mp // tile,),
        in_specs=[pl.BlockSpec((H, C, tile), lambda i: (0, 0, i))],
        out_specs=pl.BlockSpec((C, tile), lambda i: (0, i)),
        compiler_params=_cparams(1),
    )(nfT)
    return out[:, :M]


# --------------------------------------------------------------------------
# KPConv: lane-dense influence math (bf16 accumulate) + single stacked bf16
# MXU matmul; also emits GN partial moments for the conv output.
# --------------------------------------------------------------------------
def _kpconv_kernel(relT_ref, nfT_ref, kp_ref, wt_ref, o_ref, st_ref, *, sigma, num_kp):
    relT = relT_ref[...]              # (3, H, tile) f32
    nfT = nfT_ref[...]                # (H, Cin, tile) bf16
    inv_sigma = 1.0 / sigma
    blocks = []
    for k in range(num_kp):           # small, unrolled
        dx = relT[0] - kp_ref[k, 0]
        dy = relT[1] - kp_ref[k, 1]
        dz = relT[2] - kp_ref[k, 2]
        sqd = dx * dx + dy * dy + dz * dz                              # (H, tile)
        infl = jnp.maximum(1.0 - jnp.sqrt(sqd) * inv_sigma, 0.0).astype(BF16)
        blocks.append(jnp.sum(infl[:, None, :] * nfT, axis=0))         # (Cin, tile) bf16
    f = jnp.concatenate(blocks, axis=0)                                # (K*Cin, tile) bf16
    y = jnp.dot(wt_ref[...], f, preferred_element_type=jnp.float32)    # (Co, tile)
    o_ref[...] = y
    # padded lanes (zero features) contribute exact zeros -> no mask needed
    s1 = jnp.sum(y, axis=1, keepdims=True)
    s2 = jnp.sum(y * y, axis=1, keepdims=True)
    st_ref[...] = jnp.concatenate([s1, s2], axis=1)[None]              # (1, Co, 2)


def pallas_kpconv_cm(q_points, s_points, neighbor_indices, s_featsT,
                     kernel_points, weights, sigma, cap=KP_LANE_TILE):
    M, H = neighbor_indices.shape
    Cin = s_featsT.shape[0]
    K, _, Co = weights.shape
    tile = _pick_tile(M, cap)
    Mp = _round_up(max(M, 1), tile)

    # shadow neighbors gather the zero pad row -> zero contribution, no mask.
    pts_pad = jnp.concatenate([s_points.astype(F32), jnp.zeros((1, 3), F32)], axis=0)
    rel = pts_pad[neighbor_indices] - q_points.astype(F32)[:, None, :]   # (M,H,3)
    relT = _pad_axis(jnp.transpose(rel, (2, 1, 0)), 2, Mp)               # (3,H,Mp) f32

    # TODO(synk): for large point counts, gather in-kernel via scalar-prefetched
    # neighbor indices instead of materializing the Hx-expanded stream in HBM.
    feats_bf = jnp.concatenate([s_featsT.astype(BF16), jnp.zeros((Cin, 1), BF16)], axis=1)
    nfT = _pad_axis(jnp.transpose(feats_bf[:, neighbor_indices], (2, 0, 1)), 2, Mp)  # (H,Cin,Mp) bf16

    wt = jnp.transpose(weights.astype(F32).reshape(K * Cin, Co)).astype(BF16)  # (Co, K*Cin) bf16
    kp = kernel_points.astype(F32)                                             # (K, 3) -> SMEM

    conv, mom = pl.pallas_call(
        functools.partial(_kpconv_kernel, sigma=float(sigma), num_kp=K),
        out_shape=(jax.ShapeDtypeStruct((Co, Mp), F32),
                   jax.ShapeDtypeStruct((Mp // tile, Co, 2), F32)),
        grid=(Mp // tile,),
        in_specs=[
            pl.BlockSpec((3, H, tile), lambda i: (0, 0, i)),
            pl.BlockSpec((H, Cin, tile), lambda i: (0, 0, i)),
            pl.BlockSpec((K, 3), lambda i: (0, 0), memory_space=pltpu.MemorySpace.SMEM),
            pl.BlockSpec((Co, K * Cin), lambda i: (0, 0)),
        ],
        out_specs=(pl.BlockSpec((Co, tile), lambda i: (0, i)),
                   pl.BlockSpec((1, Co, 2), lambda i: (i, 0, 0))),
        compiler_params=_cparams(1),
    )(relT, nfT, kp, wt)
    return conv[:, :M], mom


# --------------------------------------------------------------------------
# residual KPConv block (channels-major features)
# --------------------------------------------------------------------------
def residual_block_forward(p, s_featsT, q_points, s_points, neighbor_indices, *,
                           sigma, groups, strided):
    Ns = s_featsT.shape[1]
    M = q_points.shape[0]

    xT = s_featsT
    if p["unary1"] is not None:
        u1 = p["unary1"]
        y1, m1 = pallas_linear_gn_cm(xT, u1["w"], u1["b"])
        sc1, sh1 = moments_to_scale_shift(m1, Ns, groups, u1["gamma"], u1["beta"])
        xT = pallas_gn_apply(y1, sc1, sh1, act=True)

    convT, mconv = pallas_kpconv_cm(q_points, s_points, neighbor_indices, xT,
                                    p["kpconv"]["kernel_points"],
                                    p["kpconv"]["weights"], sigma)
    scc, shc = moments_to_scale_shift(mconv, M, groups,
                                      p["gn_conv"]["gamma"], p["gn_conv"]["beta"])

    # unary2: conv-path GN-apply + leaky fused as the matmul prologue
    u2 = p["unary2"]
    y2, m2 = pallas_linear_gn_cm(convT, u2["w"], u2["b"],
                                 pre_scale=scc, pre_shift=shc, pre_act=True)
    sc2, sh2 = moments_to_scale_shift(m2, M, groups, u2["gamma"], u2["beta"])

    if strided:
        shortcutT = pallas_neighbor_maxpool_cm(s_featsT, neighbor_indices)
    else:
        shortcutT = s_featsT
    if p["shortcut"] is not None:
        su = p["shortcut"]
        ys, ms = pallas_linear_gn_cm(shortcutT, su["w"], su["b"])
        scs, shs = moments_to_scale_shift(ms, shortcutT.shape[1], groups,
                                          su["gamma"], su["beta"])
        shortcutT = pallas_gn_apply(ys, scs, shs, act=False)

    # final: GN-apply(unary2) + residual add + leaky, fused
    return pallas_gn_apply(y2, sc2, sh2, act=True, residualT=shortcutT)


# --------------------------------------------------------------------------
# NMS: adjacency + greedy suppression on device; only the keep mask goes host
# --------------------------------------------------------------------------
def greedy_nms_device(adj):
    # TODO(synk): exact NMS_cpu scoring rule is not public; greedy index-order
    # radius suppression is used as a deterministic stand-in.
    n = adj.shape[0]

    def body(i, state):
        keep, supp = state
        take = jnp.logical_not(supp[i])
        keep = keep.at[i].set(take)
        supp = jnp.where(take, jnp.logical_or(supp, adj[i]), supp)
        return keep, supp

    keep, _ = lax.fori_loop(0, n, body,
                            (jnp.zeros((n,), jnp.bool_), jnp.zeros((n,), jnp.bool_)))
    return keep


def radius_knn_device(sqd_masked, radius, limit, shadow_idx):
    limit = min(int(limit), sqd_masked.shape[1])
    neg_vals, idx = lax.top_k(-sqd_masked, limit)
    return jnp.where(-neg_vals <= radius * radius, idx, shadow_idx)


# --------------------------------------------------------------------------
# parameter init (deterministic, synthetic)
# --------------------------------------------------------------------------
def _dense(key, fan_in, fan_out):
    w = jax.random.normal(key, (fan_in, fan_out), F32) * (1.0 / np.sqrt(fan_in))
    return {"w": w, "b": jnp.zeros((fan_out,), F32)}


def _unary(key, fan_in, fan_out):
    d = _dense(key, fan_in, fan_out)
    d["gamma"] = jnp.ones((fan_out,), F32)
    d["beta"] = jnp.zeros((fan_out,), F32)
    return d


def _residual(key, in_ch, out_ch, num_kp, radius):
    mid = out_ch // 4
    k1, k2, k3, k4, k5 = jax.random.split(key, 5)
    p = {}
    p["unary1"] = _unary(k1, in_ch, mid) if in_ch != mid else None
    kp_pts = jax.random.uniform(k2, (num_kp, 3), F32, -1.0, 1.0) * (radius * 0.66)
    kp_w = jax.random.normal(k3, (num_kp, mid, mid), F32) * (1.0 / np.sqrt(num_kp * mid))
    p["kpconv"] = {"kernel_points": kp_pts, "weights": kp_w}
    p["gn_conv"] = {"gamma": jnp.ones((mid,), F32), "beta": jnp.zeros((mid,), F32)}
    p["unary2"] = _unary(k4, mid, out_ch)
    p["shortcut"] = _unary(k5, in_ch, out_ch) if in_ch != out_ch else None
    return p


def init_vote_params(key, in_dim):
    k1, k2 = jax.random.split(key)
    return {"mlp1": _dense(k1, in_dim, in_dim), "mlp2": _dense(k2, in_dim, 3)}


# --------------------------------------------------------------------------
# Vote_Encoder2 forward
# --------------------------------------------------------------------------
def vote_encoder2_forward(params, feats, points, lengths, cfg):
    pos_len, anc_len = int(lengths[0]), int(lengths[1])
    N = points.shape[0]
    cloud_ids_np = np.repeat(np.arange(len(lengths)), np.asarray(lengths)).astype(np.int32)
    cloud_ids = jnp.asarray(cloud_ids_np)

    featsT = jnp.transpose(feats.astype(F32))            # channels-major (C, N)

    # --- Vote layer (output_feats=False): fused MLP -> clipped xyz offsets ---
    off = pallas_vote_mlp(featsT, params["vote"]["mlp1"], params["vote"]["mlp2"],
                          cfg["max_translate"])
    shifted_points = points.astype(F32) + off

    vote_dict = {
        "shifted_pos_points_c": shifted_points[:pos_len],
        "shifted_anc_points_c": shifted_points[pos_len:pos_len + anc_len],
    }

    # --- NMS: masked sq-distances (fused) + knn scoring + device greedy NMS ---
    sqd_masked = pallas_sqdist_masked(shifted_points, shifted_points, cloud_ids, cloud_ids)
    r2 = cfg["NMS_radius"] ** 2
    knn_idx = radius_knn_device(sqd_masked, cfg["NMS_radius"],
                                cfg["neighbor_limits"][-1], N)           # (N, k)
    keep = greedy_nms_device(sqd_masked <= r2)                            # on device
    keep_np = np.asarray(keep)            # N bools to host (static downstream shapes)
    kept_idx = np.nonzero(keep_np)[0]
    length_np = np.array([int(keep_np[:pos_len].sum()), int(keep_np[pos_len:].sum())])
    vote_dict["length"] = jnp.asarray(length_np, dtype=jnp.int32)

    knn_kept = knn_idx[jnp.asarray(kept_idx)]                            # (M, k)
    shifted_pad = jnp.concatenate([shifted_points, jnp.zeros((1, 3), F32)], axis=0)
    knn_pts = shifted_pad[knn_kept]                                      # (M, k, 3)
    counts = jnp.sum((knn_kept < N).astype(F32), axis=-1)
    centers = pallas_centers(knn_pts, counts)                            # (M, 3)
    vote_dict["nms_shifted_pos_points_c"] = centers[:int(length_np[0])]
    vote_dict["nms_shifted_anc_points_c"] = centers[int(length_np[0]):]

    # --- radius searches on device (masked top-k, shadow index = #support) ---
    q_cloud_ids = jnp.asarray(cloud_ids_np[kept_idx])
    d_qs = pallas_sqdist_masked(centers, points, q_cloud_ids, cloud_ids)
    subsampling = radius_knn_device(d_qs, cfg["init_radius"] * 8,
                                    cfg["neighbor_limits"][-2], N)

    d_qq = pallas_sqdist_masked(centers, centers, q_cloud_ids, q_cloud_ids)
    neighbors = radius_knn_device(d_qq, cfg["init_radius"] * 16,
                                  cfg["neighbor_limits"][-1], centers.shape[0])

    # --- KPConv residual encoder blocks (channels-major feature layout) ---
    g = cfg["group_norm"]
    fT = residual_block_forward(params["enc6_1"], featsT, centers, points, subsampling,
                                sigma=cfg["init_sigma"] * 8, groups=g, strided=True)
    fT = residual_block_forward(params["enc6_2"], fT, centers, centers, neighbors,
                                sigma=cfg["init_sigma"] * 16, groups=g, strided=False)
    fT = residual_block_forward(params["enc6_3"], fT, centers, centers, neighbors,
                                sigma=cfg["init_sigma"] * 16, groups=g, strided=False)
    vote_dict["nms_shifted_feats_c"] = jnp.transpose(fT)                 # (M, C_out)
    return vote_dict


# --------------------------------------------------------------------------
if __name__ == "__main__":
    key = jax.random.PRNGKey(0)

    # small synthetic configuration
    init_dim = 8
    kernel_size = 5            # number of KPConv kernel points
    init_radius = 0.1
    init_sigma = 0.1
    group_norm_groups = 4
    neighbor_limits = [16, 16, 16, 8, 8]
    NMS_radius = 0.2
    pos_len, anc_len = 20, 20
    N = pos_len + anc_len
    C_in = init_dim * 4        # 32

    k_pts, k_feat, k_params = jax.random.split(key, 3)
    points = jax.random.uniform(k_pts, (N, 3), F32)           # data_dict['points'][-1]
    feats = jax.random.normal(k_feat, (N, C_in), F32)          # input feats
    lengths = (pos_len, anc_len)                               # data_dict['lengths'][-1]

    kv, k1, k2, k3 = jax.random.split(k_params, 4)
    params = {
        "vote": init_vote_params(kv, C_in),
        "enc6_1": _residual(k1, init_dim * 4, init_dim * 4, kernel_size, init_radius * 8),
        "enc6_2": _residual(k2, init_dim * 4, init_dim * 8, kernel_size, init_radius * 16),
        "enc6_3": _residual(k3, init_dim * 8, init_dim * 8, kernel_size, init_radius * 16),
    }

    cfg = dict(NMS_radius=NMS_radius, init_radius=init_radius, init_sigma=init_sigma,
               group_norm=group_norm_groups, neighbor_limits=neighbor_limits,
               max_translate=1.0)

    out = vote_encoder2_forward(params, feats, points, lengths, cfg)
    jax.block_until_ready(out["nms_shifted_feats_c"])

    M = int(out["length"][0]) + int(out["length"][1])
    assert out["nms_shifted_feats_c"].shape == (M, init_dim * 8)
    assert out["nms_shifted_pos_points_c"].shape == (int(out["length"][0]), 3)
    assert out["shifted_pos_points_c"].shape == (pos_len, 3)
    assert bool(jnp.all(jnp.isfinite(out["nms_shifted_feats_c"])))
    print("KERNEL_OK")
</pallas_src>

<mosaic_0001>
module attributes {stable_mosaic.version = 11 : i64} {
  func.func @_vote_mlp_kernel(%arg0: i32, %arg1: memref<32x128xf32, #tpu.memory_space<vmem>>, %arg2: memref<32x32xbf16, #tpu.memory_space<vmem>>, %arg3: memref<32x1xf32, #tpu.memory_space<vmem>>, %arg4: memref<3x32xbf16, #tpu.memory_space<vmem>>, %arg5: memref<3x1xf32, #tpu.memory_space<vmem>>, %arg6: memref<3x128xf32, #tpu.memory_space<vmem>>) attributes {dimension_semantics = [#tpu.dimension_semantics<parallel>], iteration_bounds = array<i64: 1>, scalar_prefetch = 0 : i64, scratch_operands = 0 : i64, tpu.core_type = #tpu.core_type<tc>, window_params = [{transform_indices = @transform_0, window_bounds = array<i64: 32, 128>}, {pipeline_mode = #tpu.pipeline_mode<synchronous>, transform_indices = @transform_1, window_bounds = array<i64: 32, 32>}, {pipeline_mode = #tpu.pipeline_mode<synchronous>, transform_indices = @transform_2, window_bounds = array<i64: 32, 1>}, {pipeline_mode = #tpu.pipeline_mode<synchronous>, transform_indices = @transform_3, window_bounds = array<i64: 3, 32>}, {pipeline_mode = #tpu.pipeline_mode<synchronous>, transform_indices = @transform_4, window_bounds = array<i64: 3, 1>}, {transform_indices = @transform_5, window_bounds = array<i64: 3, 128>}]} {
    %c0 = arith.constant 0 : index
    %c0_0 = arith.constant 0 : index
    %0 = vector.load %arg2[%c0, %c0_0] : memref<32x32xbf16, #tpu.memory_space<vmem>>, vector<32x32xbf16>
    %c0_1 = arith.constant 0 : index
    %c0_2 = arith.constant 0 : index
    %1 = vector.load %arg1[%c0_1, %c0_2] : memref<32x128xf32, #tpu.memory_space<vmem>>, vector<32x128xf32>
    %2 = arith.truncf %1 : vector<32x128xf32> to vector<32x128xbf16>
    %cst = arith.constant dense<0.000000e+00> : vector<32x128xf32>
    %3 = tpu.matmul %0, %2, %cst {dimension_numbers = #tpu.dot_dimension_numbers<[1], [0], [0], [1], [0, 0, 1, 1], [], []>} : vector<32x32xbf16>, vector<32x128xbf16>, vector<32x128xf32> -> vector<32x128xf32>
    %c0_3 = arith.constant 0 : index
    %c0_4 = arith.constant 0 : index
    %4 = vector.load %arg3[%c0_3, %c0_4] : memref<32x1xf32, #tpu.memory_space<vmem>>, vector<32x1xf32>
    %5 = vector.broadcast %4 : vector<32x1xf32> to vector<32x128xf32>
    %6 = arith.addf %3, %5 : vector<32x128xf32>
    %cst_5 = arith.constant 0.000000e+00 : f32
    %7 = vector.broadcast %cst_5 : f32 to vector<32x128xf32>
    %8 = arith.maximumf %6, %7 : vector<32x128xf32>
    %c0_6 = arith.constant 0 : index
    %c0_7 = arith.constant 0 : index
    %9 = vector.load %arg4[%c0_6, %c0_7] : memref<3x32xbf16, #tpu.memory_space<vmem>>, vector<3x32xbf16>
    %10 = arith.truncf %8 : vector<32x128xf32> to vector<32x128xbf16>
    %cst_8 = arith.constant dense<0.000000e+00> : vector<3x128xf32>
    %11 = tpu.matmul %9, %10, %cst_8 {dimension_numbers = #tpu.dot_dimension_numbers<[1], [0], [0], [1], [0, 0, 1, 1], [], []>} : vector<3x32xbf16>, vector<32x128xbf16>, vector<3x128xf32> -> vector<3x128xf32>
    %c0_9 = arith.constant 0 : index
    %c0_10 = arith.constant 0 : index
    %12 = vector.load %arg5[%c0_9, %c0_10] : memref<3x1xf32, #tpu.memory_space<vmem>>, vector<3x1xf32>
    %13 = vector.broadcast %12 : vector<3x1xf32> to vector<3x128xf32>
    %14 = arith.addf %11, %13 : vector<3x128xf32>
    %cst_11 = arith.constant -1.000000e+00 : f32
    %cst_12 = arith.constant 1.000000e+00 : f32
    %15 = vector.broadcast %cst_11 : f32 to vector<3x128xf32>
    %16 = arith.maximumf %15, %14 : vector<3x128xf32>
    %17 = vector.broadcast %cst_12 : f32 to vector<3x128xf32>
    %18 = arith.minimumf %17, %16 : vector<3x128xf32>
    %c0_13 = arith.constant 0 : index
    %c0_14 = arith.constant 0 : index
    %19 = vector.load %arg6[%c0_13, %c0_14] : memref<3x128xf32, #tpu.memory_space<vmem>>, vector<3x128xf32>
    tpu.vector_store %arg6[%c0_13, %c0_14], %18 {strides = array<i32>} : memref<3x128xf32, #tpu.memory_space<vmem>>, vector<3x128xf32>,
    return
  }
  func.func @transform_0(%arg0: i32) -> (i32, i32) {
    %c0_i32 = arith.constant 0 : i32
    %c0_i32_0 = arith.constant 0 : i32
    return %c0_i32, %arg0 : i32, i32
  }
  func.func @transform_1(%arg0: i32) -> (i32, i32) {
    %c0_i32 = arith.constant 0 : i32
    %c0_i32_0 = arith.constant 0 : i32
    %c0_i32_1 = arith.constant 0 : i32
    return %c0_i32, %c0_i32_0 : i32, i32
  }
  func.func @transform_2(%arg0: i32) -> (i32, i32) {
    %c0_i32 = arith.constant 0 : i32
    %c0_i32_0 = arith.constant 0 : i32
    %c0_i32_1 = arith.constant 0 : i32
    return %c0_i32, %c0_i32_0 : i32, i32
  }
  func.func @transform_3(%arg0: i32) -> (i32, i32) {
    %c0_i32 = arith.constant 0 : i32
    %c0_i32_0 = arith.constant 0 : i32
    %c0_i32_1 = arith.constant 0 : i32
    return %c0_i32, %c0_i32_0 : i32, i32
  }
  func.func @transform_4(%arg0: i32) -> (i32, i32) {
    %c0_i32 = arith.constant 0 : i32
    %c0_i32_0 = arith.constant 0 : i32
    %c0_i32_1 = arith.constant 0 : i32
    return %c0_i32, %c0_i32_0 : i32, i32
  }
  func.func @transform_5(%arg0: i32) -> (i32, i32) {
    %c0_i32 = arith.constant 0 : i32
    %c0_i32_0 = arith.constant 0 : i32
    return %c0_i32, %arg0 : i32, i32
  }
}

</mosaic_0001>

<bundles_post_ra>
// kernel: tpu_custom_call.1
= control target key start
LH: loop header
LB: loop body
LE: loop exit
PB: predicated region body
PF: predicated region fallthrough
CT: control target
= control target key end

     0   :  { %10 = vsyncpa [#allocation3], 0  ;;  %s392_s0 = inlined_call_operand.vmem [shape: f32[32,128], index: 0, kind: input, shape index: {}]   ;;  %s393_s1 = inlined_call_operand.hbm [shape: bf16[32,32], index: 1, kind: input, shape index: {}]   ;;  %s394_s2 = inlined_call_operand.vmem [shape: f32[32,1], index: 2, kind: input, shape index: {}]   ;;  %s395_s3 = inlined_call_operand.vmem [shape: bf16[3,32], index: 3, kind: input, shape index: {}]   ;;  %s396_s4 = inlined_call_operand.vmem [shape: f32[3,1], index: 4, kind: input, shape index: {}]   ;;  %s397_s5 = inlined_call_operand.hbm [shape: f32[3,128], index: 5, kind: output, shape index: {}]  }
   0x1   :  { %11 = vsyncpa [#allocation4], 0  ;;  %s298_s18 = smov [#allocation2]   ;;  %s250_s22 = scalar_lea.hbm %s393_s1, 256 }
   0x2   :  { %s19_s19 = sshll.u32 %s298_s18, 4  ;;  %p251_p0 = scmp.ne.s32.totalorder %s393_s1, %s250_s22  ;;  %s20_s19 = int_to_ptr.vmem [resolvable:$true] %s19_s19 }
   0x3   :  { %p254_p1 = scmp.lt.u32.totalorder %s250_s22, %s393_s1 }
   0x5   :  { %p256_p2 = pnand %p254_p1, %p251_p0 }
   0x7   :  { %259 = shalt.err (!%p256_p2)
}
   0x8   :  { %s260_s27 = scalar_lea.vmem %s20_s19, 256  ;;  %p265_p4 = scmp.lt.s32.totalorder %s20_s19, %s20_s19 }
   0x9   :  { %p261_p3 = scmp.ne.s32.totalorder %s20_s19, %s260_s27  ;;  %p266_p5 = scmp.lt.s32.totalorder %s260_s27, %s260_s27 }
   0xb   :  { %p267_p6 = por %p266_p5, %p265_p4 }
   0xd   :  { %p268_p7 = pnand %p267_p6, %p261_p3 }
   0xf   :  { %271 = shalt.err (!%p268_p7)
}
  0x10   :  { %s299_s28 = smov 64   ;;  %s300_s29 = smov 4  }
  0x11   :  { %25 = dma.hbm_to_vmem [thread:$0]  %s393_s1, 256, %s20_s19, [#allocation3], %s299_s28, %s299_s28, %s300_s29  }
  0x12   :  { %294 = dma.done.wait [#allocation3], 256  }
  0x13   :  { %295 = vsyncadd [#allocation3], 4294967040  ;;  %v301_v0 = vmov 0   ;;  %v40_v1 = vld [vmem:[%s392_s0] sm:$0xff]  ;;  %v41_v2 = vld [vmem:[%s392_s0 + $0x8] sm:$0xff]  ;;  %vm80_vm0 = vcmask 261120  }
  0x14   :  { %246 = vset.pattern.permute.xlu0 %v301_v0  ;;  %247 = vset.pattern.permute.xlu1 %v301_v0  ;;  %v42_v3 = vld [vmem:[%s392_s0 + $0x10] sm:$0xff]  ;;  %v44_v4 = vpack.c.bf16 %v41_v2, %v40_v1  ;;  %v43_v5 = vld [vmem:[%s392_s0 + $0x18] sm:$0xff]  ;;  %v248_v7 = vld [vmem:[#allocation2] sm:$0xff]   ;;  %v302_v14 = vmov 0.0   ;;  %vm303_vm1 = vmmov 0   ;;  %s304_s23 = smov [#allocation5]  }
  0x15   :  { %v45_v6 = vpack.c.bf16 %v43_v5, %v42_v3  ;;  %v46_v8 = vld [vmem:[%s394_s2] sm:$0xff]  ;;  %227 = vmatprep.mubr.msk.bf16.mxu0 %vm80_vm0, %v248_v7  ;;  %v48_v9 = vld [vmem:[%s394_s2 + $0x10] sm:$0xff]  ;;  %v47_v10 = vld [vmem:[%s394_s2 + $0x8] sm:$0xff]  ;;  %231 = vmatprep.subr.bf16.mxu1 %v302_v14  ;;  %s201_s24 = sshll.u32 %s304_s23, 4  ;;  %s202_s24 = int_to_ptr.vmem [resolvable:$true] %s201_s24 }
  0x16   :  { %223 = vmatprep.subr.bf16.mxu0 %v44_v4  ;;  %52 = vperm.xlu0 %246, %v46_v8   ;;  %v249_v11 = vld [vmem:[#allocation2 + $0x8] sm:$0xff]   ;;  %v49_v12 = vld [vmem:[%s394_s2 + $0x18] sm:$0xff]  ;;  %v143_v13 = vld [vmem:[%s396_s4] sm:$0x7]  ;;  %s272_s25 = scalar_lea.vmem %s202_s24, 64  ;;  %p277_p9 = scmp.lt.s32.totalorder %s202_s24, %s202_s24 }
  0x17   :  { %224 = vmatpush3.bf16.msra.mxu0 %v44_v4  ;;  %62 = vperm.xlu1 %247, %v48_v9   ;;  %v140_v33 = vld [vmem:[%s395_s3] sm:$0x3]  ;;  %p273_p8 = scmp.ne.s32.totalorder %s202_s24, %s272_s25  ;;  %p278_p10 = scmp.lt.s32.totalorder %s272_s25, %s272_s25 }
  0x18   :  { %225 = vmatprep.subr.bf16.mxu0 %v45_v6  ;;  %235 = vmatprep.mubr.msk.bf16.mxu1 %vm303_vm1, %v302_v14 }
  0x19   :  { %p279_p11 = por %p278_p10, %p277_p9 }
  0x1a   :  { %57 = vperm.xlu0 %246, %v47_v10  }
  0x1b   :  { %226 = vmatpush3.bf16.msra.mxu0 %v45_v6  ;;  %67 = vperm.xlu1 %247, %v49_v12   ;;  %p280_p12 = pnand %p279_p11, %p273_p8 }
  0x1e   :  { %228 = vmatmul.mubr.msk.bf16.vlgmr.msra.gmra.mrb[0].mxu0 %vm80_vm0, %v249_v11  ;;  %146 = vperm.xlu0 %246, %v143_v13  }
  0x95   :  { %v53_v16 = vpop.permute.xlu0 %52 }
  0x96   :  { %v63_v15 = vpop.permute.xlu1 %62 }
  0x99   :  { %v58_v23 = vpop.permute.xlu0 %57 }
  0x9a   :  { %v68_v18 = vpop.permute.xlu1 %67 }
  0x9d   :  { %v147_v34 = vpop.permute.xlu0 %146 }
  0xf1   :  { %v229_v17 = vpop.f32.mrb[0].mxu0 }
  0xf2   :  { %v130_v19 = vadd.f32 %v229_v17, %v63_v15  ;;  %v121_v20 = vpop.f32.mrb[1].mxu0 }
  0xf3   :  { %v122_v21 = vadd.f32 %v121_v20, %v53_v16  ;;  %v230_v22 = vpop.f32.mrb[2].mxu0 }
  0xf4   :  { %v133_v24 = vadd.f32 %v230_v22, %v68_v18  ;;  %v124_v25 = vpop.f32.mrb[3].mxu0  ;;  %v138_v27 = vmax.f32 %v130_v19, 0.0 }
  0xf5   :  { %v125_v26 = vadd.f32 %v124_v25, %v58_v23  ;;  %v136_v29 = vmax.f32 %v122_v21, 0.0 }
  0xf6   :  { %v139_v28 = vmax.f32 %v133_v24, 0.0 }
  0xf7   :  { %v137_v30 = vmax.f32 %v125_v26, 0.0 }
  0xf8   :  { %v142_v31 = vpack.c.bf16 %v139_v28, %v138_v27 }
  0xf9   :  { %v141_v32 = vpack.c.bf16 %v137_v30, %v136_v29 }
  0xfb   :  { %232 = vmatpush3.bf16.msra.mxu1 %v141_v32 }
  0xfc   :  { %233 = vmatprep.subr.bf16.mxu1 %v302_v14 }
  0xff   :  { %234 = vmatpush3.bf16.msra.mxu1 %v142_v31 }
 0x102   :  { %236 = vmatmul.mubr.msk.bf16.vlgmr.msra.gmra.mrb[0].mxu1 %vm80_vm0, %v140_v33 }
 0x1d5   :  { %v186_v35 = vpop.f32.mrb[0].mxu1 }
 0x1d6   :  { %v187_v36 = vadd.f32 %v186_v35, %v147_v34  ;;  %v237_v37 = vpop.f32.mrb[1].mxu1 }
 0x1d7   :  { %v189_v38 = vpop.f32.mrb[2].mxu1 }
 0x1d8   :  { %v215_v39 = vclamps-f32 %v187_v36, 1.0  ;;  %v238_v40 = vpop.f32.mrb[3].mxu1 }
 0x1da   :  { %194 = vst [vmem:[#allocation5] sm:$0x7] %v215_v39 }
 0x1db   :  { %283 = shalt.err (!%p280_p12)
}
 0x1dc   :  { %s284_s27 = scalar_lea.hbm %s397_s5, 64 }
 0x1dd   :  { %p285_p13 = scmp.ne.s32.totalorder %s397_s5, %s284_s27  ;;  %p288_p0 = scmp.lt.u32.totalorder %s284_s27, %s397_s5 }
 0x1df   :  { %p290_p1 = pnand %p288_p0, %p285_p13 }
 0x1e1   :  { %293 = shalt.err (!%p290_p1)
}
 0x1e2   :  { %204 = dma.vmem_to_hbm [thread:$0]  %s202_s24, 64, %s397_s5, [#allocation4]  }
 0x1e3   :  { %296 = dma.done.wait [#allocation4], 64  }
 0x1e4   :  { %297 = vsyncadd [#allocation4], 4294967232 }
 0x1e5   :  { %208 = vsyncpa [#allocation3], 1 }
 0x1e6   :  { %209 = vsyncpa [#allocation4], 1 }

</bundles_post_ra>
